<compile_context>
chip_gen: v5e
topology: v5e:2x2
jax: 0.10.0
libtpu: 0.0.40
codegen_flags: <defaults>
</compile_context>

<pallas_src>
import functools

import jax
import jax.numpy as jnp
from jax.experimental import pallas as pl
from jax.experimental.pallas import tpu as pltpu


def _round_up(x, m):
    return (x + m - 1) // m * m


# ----------------------------------------------------------------------------
# Pallas kernel: one MXU matmul (features + mask-sum) + partial-conv epilogue.
# ----------------------------------------------------------------------------
def _partial_conv_kernel(w_ref, pat_ref, out_ref, *, cout):
    # w_ref  : (CoutP, 2K) bf16   rows [0:cout] = [W_feat | 0]
    #                             row  cout     = [0 | ones]   (mask conv)
    #                             rows beyond   = 0            (padding)
    # pat_ref: (2K, TM)    bf16   [im2col(x*mask); im2col(mask)] pixel tile
    # out_ref: (CoutP, TM) f32    rows [0:cout] renormalized features,
    #                             row  cout     new_mask (exact 0/1)
    feat = jnp.dot(w_ref[...], pat_ref[...],
                   preferred_element_type=jnp.float32)            # MXU, f32 acc
    msum = feat[cout:cout + 1, :]                                 # (1, TM), exact ints
    holes = msum == 0.0                                           # (1, TM)
    inv = pl.reciprocal(jnp.where(holes, 1.0, msum), approx=True)  # EUP slot
    outv = jnp.where(holes, 0.0, feat * inv)                      # (CoutP, TM)
    new_mask = jnp.where(holes, 0.0, 1.0)                         # (1, TM)
    rows = jax.lax.broadcasted_iota(jnp.int32, (out_ref.shape[0], 1), 0)
    result = jnp.where(rows == cout,
                       jnp.broadcast_to(new_mask, outv.shape), outv)
    out_ref[...] = result.astype(out_ref.dtype)


# ----------------------------------------------------------------------------
# Glue: im2col directly into the (K, M) layout the kernel wants.
# ----------------------------------------------------------------------------
def _im2col_km(x, kh, kw, stride, padding, dilation):
    """(N, C, H, W) -> (K, M); K ordered (c, i, j) c-major (PyTorch weight
    flatten order), M ordered (n, h, w) row-major."""
    N, C, H, W = x.shape
    xp = jnp.pad(x, ((0, 0), (0, 0), (padding, padding), (padding, padding)))
    Ho = (H + 2 * padding - dilation * (kh - 1) - 1) // stride + 1
    Wo = (W + 2 * padding - dilation * (kw - 1) - 1) // stride + 1
    taps = []
    for i in range(kh):
        for j in range(kw):
            taps.append(xp[:, :,
                           i * dilation: i * dilation + stride * Ho: stride,
                           j * dilation: j * dilation + stride * Wo: stride])
    t = jnp.stack(taps, axis=2)                       # (N, C, kh*kw, Ho, Wo)
    t = t.transpose(1, 2, 0, 3, 4)                    # (C, kh*kw, N, Ho, Wo)
    return t.reshape(C * kh * kw, N * Ho * Wo), Ho, Wo


@functools.partial(jax.jit,
                   static_argnames=("kernel_size", "stride", "padding", "dilation"))
def partial_conv(x, mask, w_feat, *, kernel_size, stride=1, padding=0, dilation=1):
    """x, mask: (N, Cin, H, W) f32.  w_feat: (Cout, Cin, kh, kw) f32.
    Returns (output, new_mask), both (N, Cout, Ho, Wo) f32 (NCHW)."""
    N, Cin, H, W = x.shape
    Cout = w_feat.shape[0]
    kh = kw = kernel_size
    K = Cin * kh * kw

    # bf16 patches (mask is exactly 0/1 in bf16, so x*mask cast is lossless wrt mask).
    xm = (x * mask).astype(jnp.bfloat16)
    mb = mask.astype(jnp.bfloat16)
    xm_km, Ho, Wo = _im2col_km(xm, kh, kw, stride, padding, dilation)
    m_km, _, _ = _im2col_km(mb, kh, kw, stride, padding, dilation)
    pat = jnp.concatenate([xm_km, m_km], axis=0)      # (2K, M) bf16
    M = N * Ho * Wo

    # Large row tile to amortize per-grid-step overhead; pad M to a multiple.
    TM = 512
    if M < TM:
        TM = _round_up(M, 128)
    M_pad = _round_up(M, TM)
    if M_pad != M:
        # zero mask columns -> holes -> kernel writes exact 0s; sliced off below.
        pat = jnp.pad(pat, ((0, 0), (0, M_pad - M)))

    # Augmented weight: [W_feat | 0] feature rows, [0 | ones] mask-sum row.
    CoutP = _round_up(Cout + 1, 8)
    w_aug = jnp.zeros((CoutP, 2 * K), jnp.float32)
    w_aug = w_aug.at[:Cout, :K].set(w_feat.reshape(Cout, K))
    w_aug = w_aug.at[Cout, K:].set(1.0)
    w_aug = w_aug.astype(jnp.bfloat16)

    grid = (M_pad // TM,)
    out_flat = pl.pallas_call(
        functools.partial(_partial_conv_kernel, cout=Cout),
        out_shape=jax.ShapeDtypeStruct((CoutP, M_pad), jnp.float32),
        grid_spec=pltpu.PrefetchScalarGridSpec(
            num_scalar_prefetch=0,
            grid=grid,
            in_specs=[
                pl.BlockSpec((CoutP, 2 * K), lambda i: (0, 0)),   # resident weight
                pl.BlockSpec((2 * K, TM), lambda i: (0, i)),      # pixel tile
            ],
            out_specs=pl.BlockSpec((CoutP, TM), lambda i: (0, i)),
        ),
        compiler_params=pltpu.CompilerParams(
            dimension_semantics=("parallel",)),
    )(w_aug, pat)

    out_flat = out_flat[:, :M]                                    # drop pad cols
    out = out_flat[:Cout].reshape(Cout, N, Ho, Wo).transpose(1, 0, 2, 3)
    new_mask = jnp.broadcast_to(out_flat[Cout].reshape(N, 1, Ho, Wo),
                                (N, Cout, Ho, Wo))
    return out, new_mask


# ----------------------------------------------------------------------------
# Pure-JAX reference (mirrors the PyTorch forward) for a sanity check.
# ----------------------------------------------------------------------------
def partial_conv_ref(x, mask, w_feat, *, stride=1, padding=0, dilation=1):
    dn = jax.lax.conv_dimension_numbers(x.shape, w_feat.shape, ("NCHW", "OIHW", "NCHW"))
    conv = lambda inp, w: jax.lax.conv_general_dilated(
        inp, w, (stride, stride), [(padding, padding), (padding, padding)],
        rhs_dilation=(dilation, dilation), dimension_numbers=dn)
    output = conv(x * mask, w_feat)
    w_mask = jnp.ones_like(w_feat)
    output_mask = conv(mask, w_mask)
    holes = output_mask == 0.0
    mask_sum = jnp.where(holes, 1.0, output_mask)
    out = jnp.where(holes, 0.0, output / mask_sum)     # bias == 0
    new_mask = jnp.where(holes, 0.0, 1.0)
    return out, new_mask


if __name__ == "__main__":
    # Small deterministic configuration: in_channels=4, out_channels=8, k=3,
    # stride=1, padding=1, bias=False (defaults for dilation/groups).
    N, Cin, H, W = 2, 4, 16, 16
    Cout, ksize, stride, padding = 8, 3, 1, 1

    key = jax.random.PRNGKey(0)
    k_x, k_m, k_w = jax.random.split(key, 3)

    x = jax.random.normal(k_x, (N, Cin, H, W), dtype=jnp.float32)

    # Binary mask with a hard zero block so "no_update_holes" is exercised.
    mask = (jax.random.uniform(k_m, (N, Cin, H, W)) > 0.3).astype(jnp.float32)
    mask = mask.at[:, :, 4:9, 4:9].set(0.0)

    # kaiming_normal_ (fan_in mode, gain=sqrt(2)) on (Cout, Cin, kh, kw)
    fan_in = Cin * ksize * ksize
    std = (2.0 / fan_in) ** 0.5
    w_feat = std * jax.random.normal(k_w, (Cout, Cin, ksize, ksize), dtype=jnp.float32)

    out, new_mask = partial_conv(x, mask, w_feat,
                                 kernel_size=ksize, stride=stride, padding=padding)
    jax.block_until_ready((out, new_mask))

    out_ref, nm_ref = partial_conv_ref(x, mask, w_feat,
                                       stride=stride, padding=padding)
    assert out.shape == (N, Cout, H, W) and new_mask.shape == (N, Cout, H, W)
    # bf16 patches + approx reciprocal vs. an all-f32 reference -> modest tol.
    assert jnp.allclose(out, out_ref, atol=1e-2, rtol=1e-2)
    assert jnp.array_equal(new_mask, nm_ref)

    print("KERNEL_OK")
</pallas_src>

<mosaic_0001>
module attributes {stable_mosaic.version = 11 : i64} {
  func.func @_partial_conv_kernel(%arg0: i32, %arg1: memref<16x72xbf16, #tpu.memory_space<vmem>>, %arg2: memref<72x512xbf16, #tpu.memory_space<vmem>>, %arg3: memref<16x512xf32, #tpu.memory_space<vmem>>) attributes {dimension_semantics = [#tpu.dimension_semantics<parallel>], iteration_bounds = array<i64: 1>, scalar_prefetch = 0 : i64, scratch_operands = 0 : i64, tpu.core_type = #tpu.core_type<tc>, window_params = [{pipeline_mode = #tpu.pipeline_mode<synchronous>, transform_indices = @transform_0, window_bounds = array<i64: 16, 72>}, {transform_indices = @transform_1, window_bounds = array<i64: 72, 512>}, {transform_indices = @transform_2, window_bounds = array<i64: 16, 512>}]} {
    %c0 = arith.constant 0 : index
    %c0_0 = arith.constant 0 : index
    %0 = vector.load %arg1[%c0, %c0_0] : memref<16x72xbf16, #tpu.memory_space<vmem>>, vector<16x72xbf16>
    %c0_1 = arith.constant 0 : index
    %c0_2 = arith.constant 0 : index
    %1 = vector.load %arg2[%c0_1, %c0_2] : memref<72x512xbf16, #tpu.memory_space<vmem>>, vector<72x512xbf16>
    %cst = arith.constant dense<0.000000e+00> : vector<16x512xf32>
    %2 = tpu.matmul %0, %1, %cst {dimension_numbers = #tpu.dot_dimension_numbers<[1], [0], [0], [1], [0, 0, 1, 1], [], []>} : vector<16x72xbf16>, vector<72x512xbf16>, vector<16x512xf32> -> vector<16x512xf32>
    %3 = vector.extract_strided_slice %2 {offsets = [8, 0], sizes = [1, 512], strides = [1, 1]} : vector<16x512xf32> to vector<1x512xf32>
    %cst_3 = arith.constant 0.000000e+00 : f32
    %4 = vector.broadcast %cst_3 : f32 to vector<1x512xf32>
    %5 = arith.cmpf oeq, %3, %4 : vector<1x512xf32>
    %cst_4 = arith.constant 1.000000e+00 : f32
    %6 = vector.broadcast %cst_4 : f32 to vector<1x512xf32>
    %7 = arith.select %5, %6, %3 : vector<1x512xi1>, vector<1x512xf32>
    %8 = tpu.reciprocal %7 {approx = true} : vector<1x512xf32> -> vector<1x512xf32>
    %9 = vector.broadcast %8 : vector<1x512xf32> to vector<16x512xf32>
    %10 = arith.mulf %2, %9 : vector<16x512xf32>
    %cst_5 = arith.constant 0.000000e+00 : f32
    %11 = vector.shape_cast %5 : vector<1x512xi1> to vector<1x512xi1>
    %12 = vector.broadcast %11 : vector<1x512xi1> to vector<16x512xi1>
    %13 = vector.broadcast %cst_5 : f32 to vector<16x512xf32>
    %14 = arith.select %12, %13, %10 : vector<16x512xi1>, vector<16x512xf32>
    %cst_6 = arith.constant 0.000000e+00 : f32
    %cst_7 = arith.constant 1.000000e+00 : f32
    %15 = vector.broadcast %cst_6 : f32 to vector<1x512xf32>
    %16 = vector.broadcast %cst_7 : f32 to vector<1x512xf32>
    %17 = arith.select %5, %15, %16 : vector<1x512xi1>, vector<1x512xf32>
    %18 = tpu.iota {dimensions = array<i32: 0>} : vector<16x1xi32>
    %c8_i32 = arith.constant 8 : i32
    %19 = vector.broadcast %c8_i32 : i32 to vector<16x1xi32>
    %20 = arith.cmpi eq, %18, %19 : vector<16x1xi32>
    %21 = vector.shape_cast %17 : vector<1x512xf32> to vector<1x512xf32>
    %22 = vector.broadcast %21 : vector<1x512xf32> to vector<16x512xf32>
    %23 = vector.shape_cast %20 : vector<16x1xi1> to vector<16x1xi1>
    %24 = vector.broadcast %23 : vector<16x1xi1> to vector<16x512xi1>
    %25 = arith.select %24, %22, %14 : vector<16x512xi1>, vector<16x512xf32>
    %c0_8 = arith.constant 0 : index
    %c0_9 = arith.constant 0 : index
    %26 = vector.load %arg3[%c0_8, %c0_9] : memref<16x512xf32, #tpu.memory_space<vmem>>, vector<16x512xf32>
    tpu.vector_store %arg3[%c0_8, %c0_9], %25 {strides = array<i32>} : memref<16x512xf32, #tpu.memory_space<vmem>>, vector<16x512xf32>,
    return
  }
  func.func @transform_0(%arg0: i32) -> (i32, i32) {
    %c0_i32 = arith.constant 0 : i32
    %c0_i32_0 = arith.constant 0 : i32
    %c0_i32_1 = arith.constant 0 : i32
    return %c0_i32, %c0_i32_0 : i32, i32
  }
  func.func @transform_1(%arg0: i32) -> (i32, i32) {
    %c0_i32 = arith.constant 0 : i32
    %c0_i32_0 = arith.constant 0 : i32
    return %c0_i32, %arg0 : i32, i32
  }
  func.func @transform_2(%arg0: i32) -> (i32, i32) {
    %c0_i32 = arith.constant 0 : i32
    %c0_i32_0 = arith.constant 0 : i32
    return %c0_i32, %arg0 : i32, i32
  }
}

</mosaic_0001>

<bundles_post_ra>
// kernel: partial_conv.1
= control target key start
LH: loop header
LB: loop body
LE: loop exit
PB: predicated region body
PF: predicated region fallthrough
CT: control target
= control target key end

     0   :  { %vm131_vm0 = vcmask 1043456   ;;  %vm127_vm1 = vcmask 588800   ;;  %s559_s1 = inlined_call_operand.vmem [shape: bf16[72,512], index: 1, kind: input, shape index: {}]   ;;  %s560_s0 = inlined_call_operand.vmem [shape: bf16[16,72], index: 0, kind: input, shape index: {}]   ;;  %s561_s2 = inlined_call_operand.vmem [shape: f32[16,512], index: 2, kind: output, shape index: {}]  }
   0x1   :  { %v30_v0 = vld [vmem:[%s559_s1 + $0x80] sm:$0xff]  ;;  %v31_v1 = vld [vmem:[%s559_s1 + $0x88] sm:$0xff]  ;;  %v368_v7 = vld [vmem:[%s559_s1 + $0x6c] sm:$0xf0] }
   0x2   :  { %v87_v2 = vunpack.c.l.b16 %v30_v0  ;;  %v88_v3 = vunpack.c.h.b16 %v30_v0  ;;  %v89_v4 = vunpack.c.l.b16 %v31_v1  ;;  %v90_v5 = vunpack.c.h.b16 %v31_v1  ;;  %v335_v6 = vld [vmem:[%s559_s1 + $0x60] sm:$0xf]  ;;  %v366_v12 = vld [vmem:[%s559_s1 + $0x64] sm:$0xf]  ;;  %v337_v13 = vld [vmem:[%s559_s1 + $0x70] sm:$0xf0] }
   0x3   :  { %v343_v14 = vld [vmem:[%s559_s1 + $0x68] sm:$0xf]  ;;  %v369_v15 = vld [vmem:[%s559_s1 + $0x74] sm:$0xf0]  ;;  %v367_v16 = vld [vmem:[%s559_s1 + $0x6c] sm:$0xf]  ;;  %v336_v22 = vor.u32 %v368_v7, %v335_v6  ;;  %v340_v23 = vor.u32 %v366_v12, %v337_v13 }
   0x4   :  { %v107_v8 = vpack.c.b16 %v87_v2, %v87_v2  ;;  %v108_v9 = vpack.c.b16 %v88_v3, %v88_v3  ;;  %v109_v10 = vpack.c.b16 %v89_v4, %v89_v4  ;;  %v110_v11 = vpack.c.b16 %v90_v5, %v90_v5  ;;  %v345_v17 = vld [vmem:[%s559_s1 + $0x78] sm:$0xf0]  ;;  %v319_v24 = vld [vmem:[%s559_s1 + $0x40] sm:$0xf]  ;;  %v364_v25 = vld [vmem:[%s559_s1 + $0x4c] sm:$0xf0] }
   0x5   :  { %v344_v26 = vor.u32 %v369_v15, %v343_v14  ;;  %v348_v27 = vor.u32 %v367_v16, %v345_v17  ;;  %v362_v28 = vld [vmem:[%s559_s1 + $0x44] sm:$0xf]  ;;  %v321_v29 = vld [vmem:[%s559_s1 + $0x50] sm:$0xf0]  ;;  %v327_v30 = vld [vmem:[%s559_s1 + $0x48] sm:$0xf]  ;;  %v320_v34 = vor.u32 %v364_v25, %v319_v24  ;;  %v248_v3 = vlaneseq }
   0x6   :  { %v133_v18 = vsel %vm131_vm0, %v107_v8, 0  ;;  %v136_v19 = vsel %vm131_vm0, %v108_v9, 0  ;;  %v139_v20 = vsel %vm131_vm0, %v109_v10, 0  ;;  %v142_v21 = vsel %vm131_vm0, %v110_v11, 0  ;;  %v365_v31 = vld [vmem:[%s559_s1 + $0x54] sm:$0xf0] }
   0x7   :  { %147 = vmatpush.bf16.msra.mxu0 %v133_v18  ;;  %161 = vmatpush.bf16.msra.mxu1 %v136_v19  ;;  %v363_v32 = vld [vmem:[%s559_s1 + $0x4c] sm:$0xf]  ;;  %v329_v33 = vld [vmem:[%s559_s1 + $0x58] sm:$0xf0]  ;;  %v324_v35 = vor.u32 %v362_v28, %v321_v29  ;;  %v303_v36 = vld [vmem:[%s559_s1 + $0x20] sm:$0xf]  ;;  %v328_v38 = vor.u32 %v365_v31, %v327_v30 }
   0x8   :  { %175 = vmatpush.bf16.msra.mxu2 %v139_v20  ;;  %189 = vmatpush.bf16.msra.mxu3 %v142_v21  ;;  %v360_v37 = vld [vmem:[%s559_s1 + $0x2c] sm:$0xf0]  ;;  %v332_v39 = vor.u32 %v363_v32, %v329_v33  ;;  %v358_v40 = vld [vmem:[%s559_s1 + $0x24] sm:$0xf]  ;;  %v305_v41 = vld [vmem:[%s559_s1 + $0x30] sm:$0xf0] }
   0x9   :  { %v311_v42 = vld [vmem:[%s559_s1 + $0x28] sm:$0xf]  ;;  %v361_v43 = vld [vmem:[%s559_s1 + $0x34] sm:$0xf0]  ;;  %v359_v44 = vld [vmem:[%s559_s1 + $0x2c] sm:$0xf]  ;;  %v304_v46 = vor.u32 %v360_v37, %v303_v36  ;;  %v308_v47 = vor.u32 %v358_v40, %v305_v41 }
   0xa   :  { %v313_v45 = vld [vmem:[%s559_s1 + $0x38] sm:$0xf0]  ;;  %v287_v48 = vld [vmem:[%s559_s1] sm:$0xf]  ;;  %v356_v49 = vld [vmem:[%s559_s1 + $0xc] sm:$0xf0]  ;;  %v312_v50 = vor.u32 %v361_v43, %v311_v42 }
   0xb   :  { %148 = vmatpush.bf16.msra.mxu0 %v336_v22  ;;  %162 = vmatpush.bf16.msra.mxu1 %v340_v23  ;;  %v316_v51 = vor.u32 %v359_v44, %v313_v45  ;;  %v354_v52 = vld [vmem:[%s559_s1 + $0x4] sm:$0xf]  ;;  %v289_v53 = vld [vmem:[%s559_s1 + $0x10] sm:$0xf0]  ;;  %v295_v54 = vld [vmem:[%s559_s1 + $0x8] sm:$0xf]  ;;  %v288_v58 = vor.u32 %v356_v49, %v287_v48 }
   0xc   :  { %176 = vmatpush.bf16.msra.mxu2 %v344_v26  ;;  %190 = vmatpush.bf16.msra.mxu3 %v348_v27  ;;  %v357_v55 = vld [vmem:[%s559_s1 + $0x14] sm:$0xf0]  ;;  %v355_v56 = vld [vmem:[%s559_s1 + $0xc] sm:$0xf]  ;;  %v297_v57 = vld [vmem:[%s559_s1 + $0x18] sm:$0xf0]  ;;  %v292_v59 = vor.u32 %v354_v52, %v289_v53 }
   0xd   :  { %v296_v60 = vor.u32 %v357_v55, %v295_v54  ;;  %v300_v61 = vor.u32 %v355_v56, %v297_v57  ;;  %v353_v62 = vld [vmem:[%s560_s0] sm:$0xff]  ;;  %v249_v8 = vshrl.u32 %v248_v3, 7  ;;  %v380_v9 = vmov 0  }
   0xe   :  { %v381_v17 = vmov 1.0  }
   0xf   :  { %149 = vmatpush.bf16.msra.mxu0 %v320_v34  ;;  %163 = vmatpush.bf16.msra.mxu1 %v324_v35  ;;  %v513_v11 = vadd.s32 8, %v249_v8 }
  0x10   :  { %177 = vmatpush.bf16.msra.mxu2 %v328_v38  ;;  %191 = vmatpush.bf16.msra.mxu3 %v332_v39 }
  0x11   :  { %vm252_vm6 = vcmp.eq.s32.totalorder %v513_v11, 8 }
  0x13   :  { %150 = vmatpush.bf16.msra.mxu0 %v304_v46  ;;  %164 = vmatpush.bf16.msra.mxu1 %v308_v47 }
  0x14   :  { %178 = vmatpush.bf16.msra.mxu2 %v312_v50  ;;  %192 = vmatpush.bf16.msra.mxu3 %v316_v51 }
  0x17   :  { %151 = vmatpush.bf16.msra.mxu0 %v288_v58  ;;  %165 = vmatpush.bf16.msra.mxu1 %v292_v59 }
  0x18   :  { %179 = vmatpush.bf16.msra.mxu2 %v296_v60  ;;  %193 = vmatpush.bf16.msra.mxu3 %v300_v61 }
  0x1a   :  { %349 = vmatmul.msk.bf16.vlgmr.msra.gmra.mxu0 %vm127_vm1, %v353_v62  ;;  %350 = vmatmul.msk.bf16.vlgmr.msra.gmra.mxu1 %vm127_vm1, %v353_v62 }
  0x1b   :  { %351 = vmatmul.msk.bf16.vlgmr.msra.gmra.mxu2 %vm127_vm1, %v353_v62  ;;  %352 = vmatmul.msk.bf16.vlgmr.msra.gmra.mxu3 %vm127_vm1, %v353_v62 }
  0x97   :  { %v153_v63 = vpop.f32.mrf.mxu0  ;;  %v167_v0 = vpop.f32.mrf.mxu1 }
  0x9e   :  { %v506_v1 = vpop.f32.mrf.mxu2  ;;  %v508_v2 = vpop.f32.mrf.mxu3 }
  0x9f   :  { %v155_v4 = vpop.f32.mrf.mxu0  ;;  %v169_v5 = vpop.f32.mrf.mxu1 }
  0xa0   :  { %vm200_vm2 = vcmp.eq.f32.partialorder %v155_v4, 0.0  ;;  %vm201_vm3 = vcmp.eq.f32.partialorder %v169_v5, 0.0 }
  0xa1   :  { %v204_v6 = vsel %vm200_vm2, 1.0, %v155_v4  ;;  %v205_v7 = vsel %vm201_vm3, 1.0, %v169_v5  ;;  %v224_v10 = vsel %vm200_vm2, 1, %v380_v9  ;;  %v225_v12 = vsel %vm201_vm3, 1, %v380_v9 }
  0xa2   :  { %372 = vrcp.f32 %v204_v6  ;;  %v228_v15 = vperm.slane %v224_v10, 0  ;;  %v244_v18 = vsel %vm200_vm2, 0.0, %v381_v17  ;;  %v229_v23 = vperm.slane %v225_v12, 0 }
  0xa3   :  { %374 = vrcp.f32 %v205_v7  ;;  %v245_v24 = vsel %vm201_vm3, 0.0, %v381_v17  ;;  %v253_v28 = vperm.slane %v244_v18, 0 }
  0xa4   :  { %vm232_vm7 = vcmp.eq.s32.totalorder %v228_v15, 1  ;;  %v254_v31 = vperm.slane %v245_v24, 0  ;;  %vm233_vm8 = vcmp.eq.s32.totalorder %v229_v23, 1 }
  0xa6   :  { %v183_v13 = vpop.f32.mrf.mxu2  ;;  %v197_v14 = vpop.f32.mrf.mxu3 }
  0xa7   :  { %vm202_vm4 = vcmp.eq.f32.partialorder %v183_v13, 0.0  ;;  %vm203_vm5 = vcmp.eq.f32.partialorder %v197_v14, 0.0 }
  0xa8   :  { %v373_v16 = vpop.eup %372  ;;  %v206_v19 = vsel %vm202_vm4, 1.0, %v183_v13  ;;  %v207_v20 = vsel %vm203_vm5, 1.0, %v197_v14  ;;  %v226_v32 = vsel %vm202_vm4, 1, %v380_v9  ;;  %v227_v35 = vsel %vm203_vm5, 1, %v380_v9 }
  0xa9   :  { %v375_v21 = vpop.eup %374  ;;  %v212_v22 = vperm.slane %v373_v16, 0  ;;  %376 = vrcp.f32 %v206_v19  ;;  %v230_v41 = vperm.slane %v226_v32, 0  ;;  %v246_v44 = vsel %vm202_vm4, 0.0, %v381_v17 }
  0xaa   :  { %v213_v25 = vperm.slane %v375_v21, 0  ;;  %378 = vrcp.f32 %v207_v20  ;;  %v231_v45 = vperm.slane %v227_v35, 0  ;;  %v247_v47 = vsel %vm203_vm5, 0.0, %v381_v17 }
  0xab   :  { %v216_v26 = vmul.f32 %v212_v22, %v153_v63  ;;  %v220_v27 = vmul.f32 %v212_v22, %v155_v4  ;;  %vm234_vm9 = vcmp.eq.s32.totalorder %v230_v41, 1  ;;  %v255_v50 = vperm.slane %v246_v44, 0 }
  0xac   :  { %v217_v29 = vmul.f32 %v213_v25, %v167_v0  ;;  %v221_v30 = vmul.f32 %v213_v25, %v169_v5  ;;  %vm235_vm10 = vcmp.eq.s32.totalorder %v231_v45, 1  ;;  %v256_v55 = vperm.slane %v247_v47, 0 }
  0xad   :  { %v236_v33 = vsel %vm232_vm7, 0.0, %v216_v26  ;;  %v240_v34 = vsel %vm232_vm7, 0.0, %v220_v27 }
  0xae   :  { %v265_v36 = vsel %vm252_vm6, %v253_v28, %v240_v34  ;;  %269 = vst [vmem:[%s561_s2] sm:$0xff] %v236_v33  ;;  %v237_v37 = vsel %vm233_vm8, 0.0, %v217_v29  ;;  %v241_v38 = vsel %vm233_vm8, 0.0, %v221_v30 }
  0xaf   :  { %v377_v39 = vpop.eup %376  ;;  %273 = vst [vmem:[%s561_s2 + $0x20] sm:$0xff] %v265_v36  ;;  %v266_v40 = vsel %vm252_vm6, %v254_v31, %v241_v38 }
  0xb0   :  { %v379_v42 = vpop.eup %378  ;;  %270 = vst [vmem:[%s561_s2 + $0x8] sm:$0xff] %v237_v37  ;;  %v214_v43 = vperm.slane %v377_v39, 0 }
  0xb1   :  { %274 = vst [vmem:[%s561_s2 + $0x28] sm:$0xff] %v266_v40  ;;  %v215_v46 = vperm.slane %v379_v42, 0 }
  0xb2   :  { %v218_v48 = vmul.f32 %v214_v43, %v506_v1  ;;  %v222_v49 = vmul.f32 %v214_v43, %v183_v13 }
  0xb3   :  { %v219_v51 = vmul.f32 %v215_v46, %v508_v2  ;;  %v223_v52 = vmul.f32 %v215_v46, %v197_v14 }
  0xb4   :  { %v238_v53 = vsel %vm234_vm9, 0.0, %v218_v48  ;;  %v242_v54 = vsel %vm234_vm9, 0.0, %v222_v49 }
  0xb5   :  { %v267_v56 = vsel %vm252_vm6, %v255_v50, %v242_v54  ;;  %271 = vst [vmem:[%s561_s2 + $0x10] sm:$0xff] %v238_v53  ;;  %v239_v57 = vsel %vm235_vm10, 0.0, %v219_v51  ;;  %v243_v58 = vsel %vm235_vm10, 0.0, %v223_v52 }
  0xb6   :  { %275 = vst [vmem:[%s561_s2 + $0x30] sm:$0xff] %v267_v56  ;;  %v268_v59 = vsel %vm252_vm6, %v256_v55, %v243_v58 }
  0xb7   :  { %272 = vst [vmem:[%s561_s2 + $0x18] sm:$0xff] %v239_v57 }
  0xb8   :  { %276 = vst [vmem:[%s561_s2 + $0x38] sm:$0xff] %v268_v59 }

</bundles_post_ra>
